<compile_context>
chip_gen: v6e
topology: v6e:2x2x1
jax: 0.10.0
libtpu: 0.0.40
codegen_flags: <defaults>
</compile_context>

<pallas_src>
from functools import partial

import jax
import jax.numpy as jnp
from jax.experimental import pallas as pl
from jax.experimental.pallas import tpu as pltpu

LANE = 128        # vreg lane width
SUBLANE = 8       # vreg sublane count (f32)
MAX_BATCH_TILE = 4096


def _cdiv(a, b):
    return (a + b - 1) // b


def _round_up(n, m):
    return ((n + m - 1) // m) * m


def _mlp_kernel(x_ref, w1_ref, b1_ref, w2_ref, b2_ref, w3_ref, b3_ref, o_ref):
    """Fused 3-layer MLP for one batch tile: (Linear -> ReLU) x2 -> Linear.

    Matmul operands use the weight dtype (f32 or bf16); accumulation, bias add
    and ReLU are always f32.
    """
    cdtype = w1_ref.dtype
    x = x_ref[...].astype(cdtype)

    h1 = jnp.dot(x, w1_ref[...], preferred_element_type=jnp.float32) + b1_ref[...]
    h1 = jnp.maximum(h1, 0.0).astype(cdtype)            # F.relu

    h2 = jnp.dot(h1, w2_ref[...], preferred_element_type=jnp.float32) + b2_ref[...]
    h2 = jnp.maximum(h2, 0.0).astype(cdtype)            # F.relu

    out = jnp.dot(h2, w3_ref[...], preferred_element_type=jnp.float32) + b3_ref[...]
    o_ref[...] = out.astype(o_ref.dtype)


def prepare_params(params, use_bf16=False):
    """One-time (outside the hot path) param prep:
       - pad the output layer to a full 128-lane width (dense output stores)
       - optionally cast weights to bf16 for the MXU (biases stay f32)."""
    (w1, b1), (w2, b2), (w3, b3) = params
    action_size = w3.shape[1]
    out_pad = _round_up(action_size, LANE)
    if out_pad != action_size:
        w3 = jnp.pad(w3, ((0, 0), (0, out_pad - action_size)))
        b3 = jnp.pad(b3, ((0, 0), (0, out_pad - action_size)))
    wdtype = jnp.bfloat16 if use_bf16 else jnp.float32
    prepped = ((w1.astype(wdtype), b1.astype(jnp.float32)),
               (w2.astype(wdtype), b2.astype(jnp.float32)),
               (w3.astype(wdtype), b3.astype(jnp.float32)))
    return jax.tree_util.tree_map(jnp.asarray, prepped)


@partial(jax.jit, static_argnames=("action_size",))
def dqn_forward(x, prepared_params, action_size):
    """Pallas implementation of DQNNetwork.forward (use_noisy=False)."""
    (w1, b1), (w2, b2), (w3, b3) = prepared_params
    batch, state_size = x.shape
    h1_dim = w1.shape[1]
    h2_dim = w2.shape[1]
    out_pad = w3.shape[1]          # already padded to a multiple of 128

    # --- Batch tiling: split evenly, multiple of 8 sublanes ------------------
    n_tiles = _cdiv(batch, MAX_BATCH_TILE)
    if batch > 1024:
        # v7x has 2 TensorCores; make sure the "parallel" axis has >= 2 (even)
        # grid steps so both cores get work.
        n_tiles = _round_up(n_tiles, 2)
    tb = _round_up(_cdiv(batch, n_tiles), SUBLANE)
    grid = (_cdiv(batch, tb),)     # ragged edge tile is masked by Pallas

    # Weights/biases: constant block index across the batch grid axis so the
    # pipeline keeps them resident in VMEM (no re-DMA per batch tile).
    def w_spec(shape):
        return pl.BlockSpec(shape, lambda i: (0, 0))

    # Advisory cost hint for XLA's scheduler around this custom call.
    flops = 2 * batch * (state_size * h1_dim + h1_dim * h2_dim + h2_dim * out_pad)
    w_bytes = sum(int(a.size) * a.dtype.itemsize
                  for pair in prepared_params for a in pair)
    bytes_accessed = batch * (state_size * x.dtype.itemsize + out_pad * 4) + w_bytes
    cost = pl.CostEstimate(flops=flops, transcendentals=0,
                           bytes_accessed=bytes_accessed)

    out = pl.pallas_call(
        _mlp_kernel,
        out_shape=jax.ShapeDtypeStruct((batch, out_pad), jnp.float32),
        grid=grid,
        in_specs=[
            pl.BlockSpec((tb, state_size), lambda i: (i, 0)),  # x: tiled over batch
            w_spec((state_size, h1_dim)),
            w_spec((1, h1_dim)),
            w_spec((h1_dim, h2_dim)),
            w_spec((1, h2_dim)),
            w_spec((h2_dim, out_pad)),
            w_spec((1, out_pad)),
        ],
        out_specs=pl.BlockSpec((tb, out_pad), lambda i: (i, 0)),
        compiler_params=pltpu.CompilerParams(
            dimension_semantics=("parallel",),  # shard batch tiles across TCs (v7x)
        ),
        cost_estimate=cost,
    )(x, w1, b1, w2, b2, w3, b3)

    return out[:, :action_size]


def init_params(key, state_size, action_size, hidden_layers=(64, 64)):
    """Deterministic init mimicking nn.Linear default (uniform +/- 1/sqrt(fan_in)).

    Weights are stored as (in_features, out_features) (transposed relative to
    PyTorch's (out, in) layout), biases as (1, out_features)."""
    sizes = [state_size] + list(hidden_layers) + [action_size]
    params = []
    for fan_in, fan_out in zip(sizes[:-1], sizes[1:]):
        key, kw, kb = jax.random.split(key, 3)
        bound = 1.0 / jnp.sqrt(jnp.float32(fan_in))
        w = jax.random.uniform(kw, (fan_in, fan_out), jnp.float32, -bound, bound)
        b = jax.random.uniform(kb, (1, fan_out), jnp.float32, -bound, bound)
        params.append((w, b))
    return params


def reference_forward(x, params):
    """Pure-JAX f32 reference of the same forward pass."""
    (w1, b1), (w2, b2), (w3, b3) = params
    h = jnp.maximum(x @ w1 + b1, 0.0)
    h = jnp.maximum(h @ w2 + b2, 0.0)
    return h @ w3 + b3


def reference_forward_bf16(x, params):
    """Reference matching the bf16-operand / f32-accumulate kernel path."""
    (w1, b1), (w2, b2), (w3, b3) = params
    bf = jnp.bfloat16
    h = jnp.dot(x.astype(bf), w1.astype(bf), preferred_element_type=jnp.float32) + b1
    h = jnp.maximum(h, 0.0)
    h = jnp.dot(h.astype(bf), w2.astype(bf), preferred_element_type=jnp.float32) + b2
    h = jnp.maximum(h, 0.0)
    return jnp.dot(h.astype(bf), w3.astype(bf), preferred_element_type=jnp.float32) + b3


if __name__ == "__main__":
    state_size = 8
    action_size = 4
    hidden_layers = (64, 64)

    key = jax.random.PRNGKey(0)
    key, kx_small, kx_big = jax.random.split(key, 3)
    params = init_params(key, state_size, action_size, hidden_layers)

    params_f32 = prepare_params(params, use_bf16=False)
    params_bf16 = prepare_params(params, use_bf16=True)

    # --- Small demo batch (matches the toy module usage) --------------------
    batch = 2
    x_small = jax.random.normal(kx_small, (batch, state_size), dtype=jnp.float32)
    out_small = jax.block_until_ready(dqn_forward(x_small, params_f32, action_size))
    ref_small = reference_forward(x_small, params)
    assert out_small.shape == (batch, action_size)
    assert jnp.allclose(out_small, ref_small, atol=1e-4, rtol=1e-4)

    # --- Larger, ragged batch: exercises even tile split, >=2 parallel tiles
    #     (v7x megacore), masked edge tile, lane-padded dense output ----------
    big_batch = 1050
    x_big = jax.random.normal(kx_big, (big_batch, state_size), dtype=jnp.float32)
    out_big = jax.block_until_ready(dqn_forward(x_big, params_f32, action_size))
    ref_big = reference_forward(x_big, params)
    assert out_big.shape == (big_batch, action_size)
    assert jnp.allclose(out_big, ref_big, atol=1e-4, rtol=1e-4)

    # --- Optional bf16-operand path (f32 accumulate), looser tolerance ------
    out_bf16 = jax.block_until_ready(dqn_forward(x_big, params_bf16, action_size))
    ref_bf16 = reference_forward_bf16(x_big, params)
    assert out_bf16.shape == (big_batch, action_size)
    assert jnp.allclose(out_bf16, ref_bf16, atol=1e-2, rtol=1e-2)

    print("KERNEL_OK")
</pallas_src>

<mosaic_0001>
module attributes {stable_mosaic.version = 11 : i64} {
  func.func @_mlp_kernel(%arg0: i32, %arg1: memref<8x8xf32, #tpu.memory_space<vmem>>, %arg2: memref<8x64xf32, #tpu.memory_space<vmem>>, %arg3: memref<1x64xf32, #tpu.memory_space<vmem>>, %arg4: memref<64x64xf32, #tpu.memory_space<vmem>>, %arg5: memref<1x64xf32, #tpu.memory_space<vmem>>, %arg6: memref<64x128xf32, #tpu.memory_space<vmem>>, %arg7: memref<1x128xf32, #tpu.memory_space<vmem>>, %arg8: memref<8x128xf32, #tpu.memory_space<vmem>>) attributes {dimension_semantics = [#tpu.dimension_semantics<parallel>], iteration_bounds = array<i64: 1>, scalar_prefetch = 0 : i64, scratch_operands = 0 : i64, tpu.core_type = #tpu.core_type<tc>, window_params = [{transform_indices = @transform_0, window_bounds = array<i64: 8, 8>}, {pipeline_mode = #tpu.pipeline_mode<synchronous>, transform_indices = @transform_1, window_bounds = array<i64: 8, 64>}, {pipeline_mode = #tpu.pipeline_mode<synchronous>, transform_indices = @transform_2, window_bounds = array<i64: 1, 64>}, {pipeline_mode = #tpu.pipeline_mode<synchronous>, transform_indices = @transform_3, window_bounds = array<i64: 64, 64>}, {pipeline_mode = #tpu.pipeline_mode<synchronous>, transform_indices = @transform_4, window_bounds = array<i64: 1, 64>}, {pipeline_mode = #tpu.pipeline_mode<synchronous>, transform_indices = @transform_5, window_bounds = array<i64: 64, 128>}, {pipeline_mode = #tpu.pipeline_mode<synchronous>, transform_indices = @transform_6, window_bounds = array<i64: 1, 128>}, {transform_indices = @transform_7, window_bounds = array<i64: 8, 128>}]} {
    %c0 = arith.constant 0 : index
    %c0_0 = arith.constant 0 : index
    %0 = vector.load %arg1[%c0, %c0_0] : memref<8x8xf32, #tpu.memory_space<vmem>>, vector<8x8xf32>
    %c0_1 = arith.constant 0 : index
    %c0_2 = arith.constant 0 : index
    %1 = vector.load %arg2[%c0_1, %c0_2] : memref<8x64xf32, #tpu.memory_space<vmem>>, vector<8x64xf32>
    %cst = arith.constant dense<0.000000e+00> : vector<8x64xf32>
    %2 = tpu.matmul %0, %1, %cst {dimension_numbers = #tpu.dot_dimension_numbers<[1], [0], [0], [1], [0, 0, 1, 1], [], []>} : vector<8x8xf32>, vector<8x64xf32>, vector<8x64xf32> -> vector<8x64xf32>
    %c0_3 = arith.constant 0 : index
    %c0_4 = arith.constant 0 : index
    %3 = vector.load %arg3[%c0_3, %c0_4] : memref<1x64xf32, #tpu.memory_space<vmem>>, vector<1x64xf32>
    %4 = vector.broadcast %3 : vector<1x64xf32> to vector<8x64xf32>
    %5 = arith.addf %2, %4 : vector<8x64xf32>
    %cst_5 = arith.constant 0.000000e+00 : f32
    %6 = vector.broadcast %cst_5 : f32 to vector<8x64xf32>
    %7 = arith.maximumf %5, %6 : vector<8x64xf32>
    %c0_6 = arith.constant 0 : index
    %c0_7 = arith.constant 0 : index
    %8 = vector.load %arg4[%c0_6, %c0_7] : memref<64x64xf32, #tpu.memory_space<vmem>>, vector<64x64xf32>
    %cst_8 = arith.constant dense<0.000000e+00> : vector<8x64xf32>
    %9 = tpu.matmul %7, %8, %cst_8 {dimension_numbers = #tpu.dot_dimension_numbers<[1], [0], [0], [1], [0, 0, 1, 1], [], []>} : vector<8x64xf32>, vector<64x64xf32>, vector<8x64xf32> -> vector<8x64xf32>
    %c0_9 = arith.constant 0 : index
    %c0_10 = arith.constant 0 : index
    %10 = vector.load %arg5[%c0_9, %c0_10] : memref<1x64xf32, #tpu.memory_space<vmem>>, vector<1x64xf32>
    %11 = vector.broadcast %10 : vector<1x64xf32> to vector<8x64xf32>
    %12 = arith.addf %9, %11 : vector<8x64xf32>
    %cst_11 = arith.constant 0.000000e+00 : f32
    %13 = vector.broadcast %cst_11 : f32 to vector<8x64xf32>
    %14 = arith.maximumf %12, %13 : vector<8x64xf32>
    %c0_12 = arith.constant 0 : index
    %c0_13 = arith.constant 0 : index
    %15 = vector.load %arg6[%c0_12, %c0_13] : memref<64x128xf32, #tpu.memory_space<vmem>>, vector<64x128xf32>
    %cst_14 = arith.constant dense<0.000000e+00> : vector<8x128xf32>
    %16 = tpu.matmul %14, %15, %cst_14 {dimension_numbers = #tpu.dot_dimension_numbers<[1], [0], [0], [1], [0, 0, 1, 1], [], []>} : vector<8x64xf32>, vector<64x128xf32>, vector<8x128xf32> -> vector<8x128xf32>
    %c0_15 = arith.constant 0 : index
    %c0_16 = arith.constant 0 : index
    %17 = vector.load %arg7[%c0_15, %c0_16] : memref<1x128xf32, #tpu.memory_space<vmem>>, vector<1x128xf32>
    %18 = vector.broadcast %17 : vector<1x128xf32> to vector<8x128xf32>
    %19 = arith.addf %16, %18 : vector<8x128xf32>
    %c0_17 = arith.constant 0 : index
    %c0_18 = arith.constant 0 : index
    %20 = vector.load %arg8[%c0_17, %c0_18] : memref<8x128xf32, #tpu.memory_space<vmem>>, vector<8x128xf32>
    tpu.vector_store %arg8[%c0_17, %c0_18], %19 {strides = array<i32>} : memref<8x128xf32, #tpu.memory_space<vmem>>, vector<8x128xf32>,
    return
  }
  func.func @transform_0(%arg0: i32) -> (i32, i32) {
    %c0_i32 = arith.constant 0 : i32
    %c0_i32_0 = arith.constant 0 : i32
    return %arg0, %c0_i32 : i32, i32
  }
  func.func @transform_1(%arg0: i32) -> (i32, i32) {
    %c0_i32 = arith.constant 0 : i32
    %c0_i32_0 = arith.constant 0 : i32
    %c0_i32_1 = arith.constant 0 : i32
    return %c0_i32, %c0_i32_0 : i32, i32
  }
  func.func @transform_2(%arg0: i32) -> (i32, i32) {
    %c0_i32 = arith.constant 0 : i32
    %c0_i32_0 = arith.constant 0 : i32
    %c0_i32_1 = arith.constant 0 : i32
    return %c0_i32, %c0_i32_0 : i32, i32
  }
  func.func @transform_3(%arg0: i32) -> (i32, i32) {
    %c0_i32 = arith.constant 0 : i32
    %c0_i32_0 = arith.constant 0 : i32
    %c0_i32_1 = arith.constant 0 : i32
    return %c0_i32, %c0_i32_0 : i32, i32
  }
  func.func @transform_4(%arg0: i32) -> (i32, i32) {
    %c0_i32 = arith.constant 0 : i32
    %c0_i32_0 = arith.constant 0 : i32
    %c0_i32_1 = arith.constant 0 : i32
    return %c0_i32, %c0_i32_0 : i32, i32
  }
  func.func @transform_5(%arg0: i32) -> (i32, i32) {
    %c0_i32 = arith.constant 0 : i32
    %c0_i32_0 = arith.constant 0 : i32
    %c0_i32_1 = arith.constant 0 : i32
    return %c0_i32, %c0_i32_0 : i32, i32
  }
  func.func @transform_6(%arg0: i32) -> (i32, i32) {
    %c0_i32 = arith.constant 0 : i32
    %c0_i32_0 = arith.constant 0 : i32
    %c0_i32_1 = arith.constant 0 : i32
    return %c0_i32, %c0_i32_0 : i32, i32
  }
  func.func @transform_7(%arg0: i32) -> (i32, i32) {
    %c0_i32 = arith.constant 0 : i32
    %c0_i32_0 = arith.constant 0 : i32
    return %arg0, %c0_i32 : i32, i32
  }
}

</mosaic_0001>

<bundles_post_ra>
// kernel: dqn_forward.1
= control target key start
LH: loop header
LB: loop body
LE: loop exit
PB: predicated region body
PF: predicated region fallthrough
CT: control target
= control target key end

     0   :  { %12 = vsyncpa [#allocation3], 0  ;;  %s636_s0 = inlined_call_operand.hbm [shape: f32[2,8], index: 0, kind: input, shape index: {}]   ;;  %s637_s1 = inlined_call_operand.hbm [shape: f32[8,64], index: 1, kind: input, shape index: {}]   ;;  %s638_s2 = inlined_call_operand.vmem [shape: f32[1,64], index: 2, kind: input, shape index: {}]   ;;  %s639_s3 = inlined_call_operand.hbm [shape: f32[64,64], index: 3, kind: input, shape index: {}]   ;;  %s640_s4 = inlined_call_operand.vmem [shape: f32[1,64], index: 4, kind: input, shape index: {}]   ;;  %s641_s5 = inlined_call_operand.hbm [shape: f32[64,128], index: 5, kind: input, shape index: {}]   ;;  %s642_s6 = inlined_call_operand.vmem [shape: f32[1,128], index: 6, kind: input, shape index: {}]   ;;  %s643_s7 = inlined_call_operand.hbm [shape: f32[2,128], index: 7, kind: output, shape index: {}]  }
   0x1   :  { %13 = vsyncpa [#allocation6], 0 }
   0x2   :  { %14 = vsyncpa [#allocation9], 0 }
   0x3   :  { %15 = vsyncpa [#allocation4], 0 }
   0x4   :  { %20 = vsyncadd [#allocation3], 96  ;;  %s550_s24 = smov [#allocation5]   ;;  %s551_s26 = smov [#allocation2]  }
   0x5   :  { %s34_s25 = sshll.u32 %s550_s24, 4  ;;  %s21_s27 = sshll.u32 %s551_s26, 4  ;;  %s35_s25 = int_to_ptr.vmem [resolvable:$true] %s34_s25  ;;  %s22_s27 = int_to_ptr.vmem [resolvable:$true] %s21_s27 }
   0x6   :  { %s450_s28 = scalar_lea.vmem %s35_s25, 128  ;;  %p455_p1 = scmp.lt.s32.totalorder %s35_s25, %s35_s25 }
   0x7   :  { %p451_p0 = scmp.ne.s32.totalorder %s35_s25, %s450_s28  ;;  %p456_p2 = scmp.lt.s32.totalorder %s450_s28, %s450_s28 }
   0x9   :  { %p457_p3 = por %p456_p2, %p455_p1 }
   0xb   :  { %p458_p4 = pnand %p457_p3, %p451_p0 }
   0xd   :  { %461 = shalt.err (!%p458_p4)
}
   0xe   :  { %37 = dma.hbm_to_vmem [thread:$0]  %s637_s1, 128, %s35_s25, [#allocation6]  }
   0xf   :  { %s470_s8 = scalar_lea.vmem %s22_s27, 32  ;;  %s474_s9 = scalar_lea.vmem %s22_s27, 128 }
  0x10   :  { %p471_p5 = scmp.ne.s32.totalorder %s22_s27, %s470_s8  ;;  %p475_p6 = scmp.lt.s32.totalorder %s22_s27, %s22_s27 }
  0x11   :  { %p476_p7 = scmp.lt.s32.totalorder %s474_s9, %s470_s8 }
  0x13   :  { %p477_p8 = por %p476_p7, %p475_p6 }
  0x15   :  { %p478_p9 = pnand %p477_p8, %p471_p5 }
  0x17   :  { %481 = shalt.err (!%p478_p9)
}
  0x18   :  { %s552_s10 = smov 32   ;;  %s553_s11 = smov 2  }
  0x19   :  { %27 = dma.hbm_to_vmem [thread:$0]  %s636_s0, 32, %s22_s27, [#allocation3], %s552_s10, %s552_s10, %s553_s11  }
  0x1a   :  { %s554_s14 = smov [#allocation7]  }
  0x1b   :  { %s45_s15 = sshll.u32 %s554_s14, 4  ;;  %s46_s15 = int_to_ptr.vmem [resolvable:$true] %s45_s15 }
  0x1c   :  { %s490_s1 = scalar_lea.vmem %s46_s15, 1024  ;;  %p495_p11 = scmp.lt.s32.totalorder %s46_s15, %s46_s15 }
  0x1d   :  { %p491_p10 = scmp.ne.s32.totalorder %s46_s15, %s490_s1  ;;  %p496_p12 = scmp.lt.s32.totalorder %s490_s1, %s490_s1 }
  0x1f   :  { %p497_p13 = por %p496_p12, %p495_p11 }
  0x21   :  { %p498_p0 = pnand %p497_p13, %p491_p10 }
  0x23   :  { %501 = shalt.err (!%p498_p0)
}
  0x24   :  { %s555_s16 = smov 128   ;;  %s556_s17 = smov 8  }
  0x25   :  { %51 = dma.hbm_to_vmem [thread:$0]  %s639_s3, 1024, %s46_s15, [#allocation6], %s555_s16, %s555_s16, %s556_s17  }
  0x26   :  { %s557_s20 = smov [#allocation8]  }
  0x27   :  { %s59_s21 = sshll.u32 %s557_s20, 4  ;;  %s60_s21 = int_to_ptr.vmem [resolvable:$true] %s59_s21 }
  0x28   :  { %s510_s0 = scalar_lea.vmem %s60_s21, 1024  ;;  %p515_p2 = scmp.lt.s32.totalorder %s60_s21, %s60_s21 }
  0x29   :  { %p511_p1 = scmp.ne.s32.totalorder %s60_s21, %s510_s0  ;;  %p516_p3 = scmp.lt.s32.totalorder %s510_s0, %s510_s0 }
  0x2b   :  { %p517_p4 = por %p516_p3, %p515_p2 }
  0x2d   :  { %p518_p5 = pnand %p517_p4, %p511_p1 }
  0x2f   :  { %521 = shalt.err (!%p518_p5)
}
  0x30   :  { %65 = dma.hbm_to_vmem [thread:$0]  %s641_s5, 1024, %s60_s21, [#allocation9], %s555_s16, %s555_s16, %s556_s17  }
  0x31   :  { %542 = dma.done.wait [#allocation3], 128  }
  0x32   :  { %543 = vsyncadd [#allocation3], 4294967168 }
  0x33   :  { %544 = dma.done.wait [#allocation6], 1152  }
  0x34   :  { %545 = vsyncadd [#allocation6], 4294966144 }
  0x35   :  { %546 = dma.done.wait [#allocation9], 1024  }
  0x36   :  { %547 = vsyncadd [#allocation9], 4294966272  ;;  %v558_v0 = vmov 0.0   ;;  %vm559_vm0 = vmmov 0   ;;  %vm89_vm1 = vcmask 64512   ;;  %v81_v1 = vld [vmem:[#allocation5] sm:$0xff] }
  0x37   :  { %388 = vmatprep.subr.mxu0 %v558_v0  ;;  %390 = vmatprep.mubr.msk.f32.mxu0 %vm559_vm0, %v558_v0  ;;  %v80_v2 = vld [vmem:[#allocation2] sm:$0xff]  ;;  %v171_v3 = vld [vmem:[#allocation7 + $0x38] sm:$0xff]  ;;  %v169_v5 = vld [vmem:[#allocation7 + $0x28] sm:$0xff]  ;;  %vm179_vm2 = vcmask 523264  }
  0x38   :  { %393 = vmatprep.subr.mxu1 %v558_v0  ;;  %409 = vmatprep.mubr.msk.f32.mxu1 %vm559_vm0, %v558_v0  ;;  %v170_v4 = vld [vmem:[#allocation7 + $0x30] sm:$0xff]  ;;  %v168_v6 = vld [vmem:[#allocation7 + $0x20] sm:$0xff]  ;;  %v167_v7 = vld [vmem:[#allocation7 + $0x18] sm:$0xff] }
  0x39   :  { %389 = vmatpush3.msra.mxu0 %v81_v1  ;;  %394 = vmatpush3.msra.mxu1 %v171_v3  ;;  %v166_v8 = vld [vmem:[#allocation7 + $0x10] sm:$0xff]  ;;  %v165_v9 = vld [vmem:[#allocation7 + $0x8] sm:$0xff]  ;;  %v164_v10 = vld [vmem:[#allocation7] sm:$0xff] }
  0x3a   :  { %391 = vmatmul.mubr.msk.f32.vlgmr.msra.gmra.mxu0 %vm89_vm1, %v80_v2  ;;  %395 = vmatprep.subr.mxu1 %v558_v0  ;;  %v261_v11 = vld [vmem:[#allocation8 + $0x38] sm:$0xff]  ;;  %v260_v12 = vld [vmem:[#allocation8 + $0x30] sm:$0xff]  ;;  %v259_v13 = vld [vmem:[#allocation8 + $0x28] sm:$0xff] }
  0x3b   :  { %396 = vmatpush3.msra.mxu1 %v170_v4  ;;  %412 = vmatprep.subr.mxu0 %v558_v0  ;;  %v258_v14 = vld [vmem:[#allocation8 + $0x20] sm:$0xff]  ;;  %v257_v15 = vld [vmem:[#allocation8 + $0x18] sm:$0xff]  ;;  %v362_v16 = vld [vmem:[%s638_s2] ss:$0 sm:$0xff] }
  0x3c   :  { %397 = vmatprep.subr.mxu1 %v558_v0  ;;  %428 = vmatprep.mubr.msk.f32.mxu0 %vm559_vm0, %v558_v0  ;;  %v256_v21 = vld [vmem:[#allocation8 + $0x10] sm:$0xff]  ;;  %v255_v22 = vld [vmem:[#allocation8 + $0x8] sm:$0xff]  ;;  %v254_v23 = vld [vmem:[#allocation8] sm:$0xff] }
  0x3d   :  { %398 = vmatpush3.msra.mxu1 %v169_v5  ;;  %413 = vmatpush3.msra.mxu0 %v261_v11  ;;  %v364_v24 = vld [vmem:[%s640_s4] ss:$0 sm:$0xff] }
  0x3e   :  { %399 = vmatprep.subr.mxu1 %v558_v0  ;;  %414 = vmatprep.subr.mxu0 %v558_v0  ;;  %v366_v29 = vld [vmem:[%s642_s6] ss:$0 sm:$0xff] }
  0x3f   :  { %400 = vmatpush3.msra.mxu1 %v168_v6  ;;  %415 = vmatpush3.msra.mxu0 %v260_v12 }
  0x40   :  { %401 = vmatprep.subr.mxu1 %v558_v0  ;;  %416 = vmatprep.subr.mxu0 %v558_v0 }
  0x41   :  { %402 = vmatpush3.msra.mxu1 %v167_v7  ;;  %417 = vmatpush3.msra.mxu0 %v259_v13 }
  0x42   :  { %403 = vmatprep.subr.mxu1 %v558_v0  ;;  %418 = vmatprep.subr.mxu0 %v558_v0 }
  0x43   :  { %404 = vmatpush3.msra.mxu1 %v166_v8  ;;  %419 = vmatpush3.msra.mxu0 %v258_v14 }
  0x44   :  { %405 = vmatprep.subr.mxu1 %v558_v0  ;;  %420 = vmatprep.subr.mxu0 %v558_v0 }
  0x45   :  { %406 = vmatpush3.msra.mxu1 %v165_v9  ;;  %421 = vmatpush3.msra.mxu0 %v257_v15 }
  0x46   :  { %407 = vmatprep.subr.mxu1 %v558_v0  ;;  %422 = vmatprep.subr.mxu0 %v558_v0 }
  0x47   :  { %408 = vmatpush3.msra.mxu1 %v164_v10  ;;  %423 = vmatpush3.msra.mxu0 %v256_v21 }
  0x48   :  { %424 = vmatprep.subr.mxu0 %v558_v0 }
  0x49   :  { %425 = vmatpush3.msra.mxu0 %v255_v22 }
  0x4a   :  { %426 = vmatprep.subr.mxu0 %v558_v0 }
  0x4b   :  { %427 = vmatpush3.msra.mxu0 %v254_v23 }
  0xfa   :  { %v159_v17 = vpop.f32.mrf.mxu0 }
  0xfb   :  { %v160_v18 = vadd.f32 %v362_v16, %v159_v17 }
  0xfc   :  { %v392_v19 = vpop.f32.mrf.mxu0 }
  0xfd   :  { %v163_v20 = vmax.f32 %v160_v18, 0.0 }
  0xff   :  { %410 = vmatmul.mubr.msk.f32.vlgmr.msra.gmra.mxu1 %vm179_vm2, %v163_v20 }
 0x1bf   :  { %v249_v25 = vpop.f32.mrf.mxu1 }
 0x1c0   :  { %v250_v26 = vadd.f32 %v364_v24, %v249_v25 }
 0x1c1   :  { %v411_v27 = vpop.f32.mrf.mxu1 }
 0x1c2   :  { %v253_v28 = vmax.f32 %v250_v26, 0.0 }
 0x1c4   :  { %429 = vmatmul.mubr.msk.f32.vlgmr.msra.gmra.mxu0 %vm179_vm2, %v253_v28 }
 0x284   :  { %v338_v30 = vpop.f32.mrf.mxu0 }
 0x285   :  { %v339_v31 = vadd.f32 %v366_v29, %v338_v30 }
 0x286   :  { %v430_v32 = vpop.f32.mrf.mxu0 }
 0x287   :  { %342 = vst [vmem:[#allocation10] sm:$0xff] %v339_v31 }
 0x288   :  { %347 = vsyncadd [#allocation4], 96  ;;  %s560_s27 = smov [#allocation10]  }
 0x289   :  { %s348_s28 = sshll.u32 %s560_s27, 4  ;;  %s349_s28 = int_to_ptr.vmem [resolvable:$true] %s348_s28 }
 0x28a   :  { %s522_s29 = scalar_lea.vmem %s349_s28, 32  ;;  %s526_s4 = scalar_lea.vmem %s349_s28, 128 }
 0x28b   :  { %p523_p6 = scmp.ne.s32.totalorder %s349_s28, %s522_s29  ;;  %p527_p7 = scmp.lt.s32.totalorder %s349_s28, %s349_s28 }
 0x28c   :  { %p528_p8 = scmp.lt.s32.totalorder %s526_s4, %s522_s29 }
 0x28e   :  { %p529_p9 = por %p528_p8, %p527_p7 }
 0x290   :  { %p530_p10 = pnand %p529_p9, %p523_p6 }
 0x292   :  { %533 = shalt.err (!%p530_p10)
}
 0x293   :  { %354 = dma.vmem_to_hbm [thread:$0]  %s349_s28, 32, %s643_s7, [#allocation4], %s552_s10, %s552_s10, %s553_s11  }
 0x294   :  { %548 = dma.done.wait [#allocation4], 128  }
 0x295   :  { %549 = vsyncadd [#allocation4], 4294967168 }
 0x296   :  { %358 = vsyncpa [#allocation3], 1 }
 0x297   :  { %359 = vsyncpa [#allocation6], 1 }
 0x298   :  { %360 = vsyncpa [#allocation9], 1 }
 0x299   :  { %361 = vsyncpa [#allocation4], 1 }

</bundles_post_ra>
